<compile_context>
chip_gen: v5e
topology: v5e:2x2
jax: 0.10.0
libtpu: 0.0.40
codegen_flags: <defaults>
</compile_context>

<pallas_src>
import functools

import jax
import jax.numpy as jnp
from jax.experimental import pallas as pl
from jax.experimental.pallas import tpu as pltpu


def _maxpool_kernel(x_ref, o_ref, *scratch, kh, kw, s, p, fill):
    """Max-pool one block of N*C planes.

    x_ref: (tb, H, W) input block; o_ref: (tb, h_out, w_out) output block.
    scratch: [pad_h_ref (tb, H+2p, W)]  (only if p > 0)
             [t_ref     (tb, W+2p, h_out)]
    """
    tb, h, w = x_ref.shape
    _, h_out, w_out = o_ref.shape

    def shift_max(src_ref, k, out_len):
        # result[:, i, :] = max_{d < k} src_ref[:, d + i*s, :]
        # Strided access is only ever on the sublane (second-minor) axis; the
        # lane (last) axis stays contiguous.
        def rd(d):
            if s == 1:
                return src_ref[:, pl.ds(d, out_len), :]
            return src_ref[:, pl.ds(d, out_len, s), :]
        acc = rd(0)
        for d in range(1, k):
            acc = jnp.maximum(acc, rd(d))
        return acc

    idx = 0
    if p > 0:
        # Pad H only, with border-only fills (top/bottom strips), then the
        # interior copy.  W padding is applied later in the transposed stage.
        pad_h = scratch[idx]
        idx += 1                                           # (tb, h + 2p, w)
        pad_h[:, pl.ds(0, p), :] = jnp.full((tb, p, w), fill, pad_h.dtype)
        pad_h[:, pl.ds(p + h, p), :] = jnp.full((tb, p, w), fill, pad_h.dtype)
        pad_h[:, pl.ds(p, h), :] = x_ref[...]
        src = pad_h
    else:
        src = x_ref

    # Pass 1: sliding max over the kh window rows (H on sublanes, stride
    # folded into the strided reads).
    hmax = shift_max(src, kh, h_out)                       # (tb, h_out, w)

    # Stage W onto the sublane axis (small on-chip minor-dim transpose) so the
    # W window walk is also sublane-strided; fuse the W border fill here.
    t_ref = scratch[idx]                                   # (tb, w + 2p, h_out)
    if p > 0:
        t_ref[:, pl.ds(0, p), :] = jnp.full((tb, p, h_out), fill, t_ref.dtype)
        t_ref[:, pl.ds(p + w, p), :] = jnp.full((tb, p, h_out), fill, t_ref.dtype)
    t_ref[:, pl.ds(p, w), :] = jnp.swapaxes(hmax, 1, 2)

    # Pass 2: sliding max over the kw window columns (W now on sublanes).
    wmax = shift_max(t_ref, kw, w_out)                     # (tb, w_out, h_out)
    o_ref[...] = jnp.swapaxes(wmax, 1, 2)


def maxpool2d(x, kernel_size, stride=None, padding=0):
    """Pallas TPU max pooling over an NCHW tensor (PyTorch floor-mode)."""
    if stride is None:
        stride = kernel_size                  # nn.MaxPool2d default
    kh = kw = int(kernel_size)
    s = int(stride)
    p = int(padding)

    n, c, h, w = x.shape
    nc = n * c
    hp, wp = h + 2 * p, w + 2 * p
    h_out = (hp - kh) // s + 1                # floor mode (ceil_mode not forwarded)
    w_out = (wp - kw) // s + 1
    if h_out <= 0 or w_out <= 0:
        raise ValueError("pooling window larger than (padded) input")

    dtype = x.dtype
    if jnp.issubdtype(dtype, jnp.floating):
        fill = -float("inf")                  # PyTorch pads floats with -inf
    else:
        fill = int(jnp.iinfo(dtype).min)      # dtype-correct fill for ints
    itemsize = jnp.dtype(dtype).itemsize

    # ---- per-generation VMEM budget -------------------------------------
    vmem_cap = 64 << 20                       # safe default (v7x physical)
    try:
        info = pltpu.get_tpu_info()
        for name in ("vmem_capacity_bytes", "vmem_bytes", "vmem_size_bytes"):
            v = getattr(info, name, None)
            if isinstance(v, int) and v > 0:
                vmem_cap = int(v)
                break
    except Exception:
        pass
    # v5e/v6e (128 MiB) -> 96 MiB limit; v7x (64 MiB) -> 48 MiB limit.
    vmem_limit = max(32 << 20, min((vmem_cap * 3) // 4, 96 << 20))
    budget = (vmem_limit * 3) // 4            # headroom below the limit

    # ---- VMEM footprint per N*C plane inside one block -------------------
    # Includes (8,128)-tile rounding, double-buffered in/out blocks, scratch
    # buffers and the hmax/wmax intermediates (counted twice for safety).
    def fp(rows, cols):
        sub = 8 * max(1, 4 // itemsize)       # f32:8, bf16:16, int8:32 sublanes
        r = -(-max(rows, 1) // sub) * sub
        l = -(-max(cols, 1) // 128) * 128
        return r * l

    per_nc = itemsize * (
        2 * fp(h, w)                          # input block, double-buffered
        + 2 * fp(h_out, w_out)                # output block, double-buffered
        + (fp(hp, w) if p > 0 else 0)         # H-padded scratch
        + fp(wp, h_out)                       # transposed staging scratch
        + 2 * fp(h_out, w)                    # hmax intermediate (+slack)
        + 2 * fp(w_out, h_out))               # wmax intermediate (+slack)

    if per_nc > budget:
        # Even a single (1, H, W) plane busts the budget: best effort — raise
        # the limit toward physical VMEM.
        # TODO(synk): add H-blocking with a (kh - s) halo for very large
        # spatial planes (matters most on v7x's 64 MiB VMEM).
        vmem_limit = min(int(vmem_cap * 0.9), max(vmem_limit, per_nc + (4 << 20)))

    tb = max(1, min(nc, budget // per_nc))
    # Keep >= 4 grid steps (when nc allows) so both v7x TensorCores get work
    # and the auto-pipeline has blocks to overlap; per-step cost is ~0.35 us.
    min_steps = min(nc, 4)
    tb = min(tb, max(1, nc // min_steps))
    grid = (pl.cdiv(nc, tb),)

    scratch = []
    if p > 0:
        scratch.append(pltpu.VMEM((tb, hp, w), dtype))
    scratch.append(pltpu.VMEM((tb, wp, h_out), dtype))

    cost = pl.CostEstimate(
        flops=(kh * kw - 1) * nc * h_out * w_out,
        transcendentals=0,
        bytes_accessed=itemsize * nc * (h * w + h_out * w_out))

    out_flat = pl.pallas_call(
        functools.partial(_maxpool_kernel, kh=kh, kw=kw, s=s, p=p, fill=fill),
        out_shape=jax.ShapeDtypeStruct((nc, h_out, w_out), dtype),
        grid_spec=pltpu.PrefetchScalarGridSpec(
            num_scalar_prefetch=0,
            grid=grid,
            in_specs=[pl.BlockSpec((tb, h, w), lambda i: (i, 0, 0))],
            out_specs=pl.BlockSpec((tb, h_out, w_out), lambda i: (i, 0, 0)),
            scratch_shapes=scratch),
        compiler_params=pltpu.CompilerParams(
            dimension_semantics=("parallel",),
            vmem_limit_bytes=vmem_limit),
        cost_estimate=cost,
    )(x.reshape(nc, h, w))                    # reshape only; no HBM transpose

    return out_flat.reshape(n, c, h_out, w_out)


# TODO(synk): `return_indices`, `ceil_mode`, `dilation` are accepted by the
# PyTorch module's __init__ but never passed to its numpy Pooling backend, so
# they are intentionally not implemented here.
# TODO(synk): softposit (posit8/16/32) dtype emulation and the FPGA offload
# path have no TPU equivalent; compute is done in the input dtype.
# TODO(synk): on v5e (no native bf16 VPU max) a one-time f32 upcast of the
# tile may help bf16 inputs; not special-cased here.


if __name__ == "__main__":
    key = jax.random.PRNGKey(0)
    x = jax.random.normal(key, (2, 4, 16, 16), dtype=jnp.float32)

    def ref_pool(x, k, s, p):
        return jax.lax.reduce_window(
            x, -jnp.inf, jax.lax.max,
            window_dimensions=(1, 1, k, k),
            window_strides=(1, 1, s, s),
            padding=((0, 0), (0, 0), (p, p), (p, p)))

    # 1) canonical 2x2 / stride 2 (non-overlapping, no padding)
    y1 = jax.block_until_ready(maxpool2d(x, 2, stride=2, padding=0))
    assert y1.shape == (2, 4, 8, 8), y1.shape
    assert jnp.allclose(y1, ref_pool(x, 2, 2, 0)), "mismatch (2x2/s2/p0)"

    # 2) overlapping window + fused -inf padding (3x3 / stride 2 / pad 1)
    y2 = jax.block_until_ready(maxpool2d(x, 3, stride=2, padding=1))
    assert y2.shape == (2, 4, 8, 8), y2.shape
    assert jnp.allclose(y2, ref_pool(x, 3, 2, 1)), "mismatch (3x3/s2/p1)"

    # 3) odd output extent + padding (2x2 / stride 2 / pad 1)
    y3 = jax.block_until_ready(maxpool2d(x, 2, stride=2, padding=1))
    assert y3.shape == (2, 4, 9, 9), y3.shape
    assert jnp.allclose(y3, ref_pool(x, 2, 2, 1)), "mismatch (2x2/s2/p1)"

    # 4) stride-1 path (3x3 / stride 1 / pad 1)
    y4 = jax.block_until_ready(maxpool2d(x, 3, stride=1, padding=1))
    assert y4.shape == (2, 4, 16, 16), y4.shape
    assert jnp.allclose(y4, ref_pool(x, 3, 1, 1)), "mismatch (3x3/s1/p1)"

    print("KERNEL_OK")
</pallas_src>

<mosaic_0001>
module attributes {stable_mosaic.version = 11 : i64} {
  func.func @_maxpool_kernel(%arg0: i32, %arg1: memref<2x16x16xf32, #tpu.memory_space<vmem>>, %arg2: memref<2x8x8xf32, #tpu.memory_space<vmem>>, %arg3: memref<2x16x8xf32, #tpu.memory_space<vmem>>) attributes {dimension_semantics = [#tpu.dimension_semantics<parallel>], iteration_bounds = array<i64: 4>, scalar_prefetch = 0 : i64, scratch_operands = 1 : i64, tpu.core_type = #tpu.core_type<tc>, window_params = [{transform_indices = @transform_0, window_bounds = array<i64: 2, 16, 16>}, {transform_indices = @transform_1, window_bounds = array<i64: 2, 8, 8>}]} {
    %c0 = arith.constant 0 : index
    %c0_0 = arith.constant 0 : index
    %c0_1 = arith.constant 0 : index
    %0 = tpu.strided_load %arg1[%c0, %c0_0, %c0_1] {strides = array<i32: 1, 2, 1>} : memref<2x16x16xf32, #tpu.memory_space<vmem>>, vector<2x8x16xf32>
    %c0_2 = arith.constant 0 : index
    %c1 = arith.constant 1 : index
    %c0_3 = arith.constant 0 : index
    %1 = tpu.strided_load %arg1[%c0_2, %c1, %c0_3] {strides = array<i32: 1, 2, 1>} : memref<2x16x16xf32, #tpu.memory_space<vmem>>, vector<2x8x16xf32>
    %2 = arith.maximumf %0, %1 : vector<2x8x16xf32>
    %3 = tpu.transpose %2, [0, 2, 1] : vector<2x8x16xf32> -> vector<2x16x8xf32>
    %c0_4 = arith.constant 0 : index
    %c0_5 = arith.constant 0 : index
    %c0_6 = arith.constant 0 : index
    %4 = vector.load %arg3[%c0_4, %c0_5, %c0_6] : memref<2x16x8xf32, #tpu.memory_space<vmem>>, vector<2x16x8xf32>
    tpu.vector_store %arg3[%c0_4, %c0_5, %c0_6], %3 {strides = array<i32>} : memref<2x16x8xf32, #tpu.memory_space<vmem>>, vector<2x16x8xf32>,
    %c0_7 = arith.constant 0 : index
    %c0_8 = arith.constant 0 : index
    %c0_9 = arith.constant 0 : index
    %5 = tpu.strided_load %arg3[%c0_7, %c0_8, %c0_9] {strides = array<i32: 1, 2, 1>} : memref<2x16x8xf32, #tpu.memory_space<vmem>>, vector<2x8x8xf32>
    %c0_10 = arith.constant 0 : index
    %c1_11 = arith.constant 1 : index
    %c0_12 = arith.constant 0 : index
    %6 = tpu.strided_load %arg3[%c0_10, %c1_11, %c0_12] {strides = array<i32: 1, 2, 1>} : memref<2x16x8xf32, #tpu.memory_space<vmem>>, vector<2x8x8xf32>
    %7 = arith.maximumf %5, %6 : vector<2x8x8xf32>
    %8 = tpu.transpose %7, [0, 2, 1] : vector<2x8x8xf32> -> vector<2x8x8xf32>
    %c0_13 = arith.constant 0 : index
    %c0_14 = arith.constant 0 : index
    %c0_15 = arith.constant 0 : index
    %9 = vector.load %arg2[%c0_13, %c0_14, %c0_15] : memref<2x8x8xf32, #tpu.memory_space<vmem>>, vector<2x8x8xf32>
    tpu.vector_store %arg2[%c0_13, %c0_14, %c0_15], %8 {strides = array<i32>} : memref<2x8x8xf32, #tpu.memory_space<vmem>>, vector<2x8x8xf32>,
    return
  }
  func.func @transform_0(%arg0: i32) -> (i32, i32, i32) {
    %c0_i32 = arith.constant 0 : i32
    %c0_i32_0 = arith.constant 0 : i32
    %c0_i32_1 = arith.constant 0 : i32
    return %arg0, %c0_i32, %c0_i32_0 : i32, i32, i32
  }
  func.func @transform_1(%arg0: i32) -> (i32, i32, i32) {
    %c0_i32 = arith.constant 0 : i32
    %c0_i32_0 = arith.constant 0 : i32
    %c0_i32_1 = arith.constant 0 : i32
    return %arg0, %c0_i32, %c0_i32_0 : i32, i32, i32
  }
}

</mosaic_0001>

<bundles_post_ra>
// kernel: tpu_custom_call.1
= control target key start
LH: loop header
LB: loop body
LE: loop exit
PB: predicated region body
PF: predicated region fallthrough
CT: control target
= control target key end

     0   :  { %6 = vsyncpa [#allocation4], 0  ;;  %s698_s0 = inlined_call_operand.hbm [shape: f32[8,16,16], index: 0, kind: input, shape index: {}]   ;;  %s699_s1 = inlined_call_operand.hbm [shape: f32[8,8,8], index: 1, kind: output, shape index: {}]  }
   0x1   :  { %8 = vsyncpa [#allocation4 + $0x1], 0 }
   0x2   :  { %9 = vsyncpa [#allocation5], 0 }
   0x3   :  { %11 = vsyncpa [#allocation5 + $0x1], 0  ;;  %s566_s6 = smov 0   ;;  %s568_s7 = smov 0  }
   0x4   :  { %s570_s8 = smov 0   ;;  %s572_s9 = smov 0  }
   0x5 LB: > { %s587_s10 = sadd.s32 4294967295, %s550_s9   ;;  %s382_s11 = sadd.s32 4294967294, %s550_s9   ;;  %s550_s9 = sphi %s572_s9, %s708_s9   ;;  %s546_s8 = sphi %s570_s8, %s707_s8   ;;  %s542_s7 = sphi %s568_s7, %s706_s7   ;;  %s538_s6 = sphi %s566_s6, %s705_s6  }
   0x6   : > { %s591_s12 = sadd.s32 1, %s550_s9   ;;  %s24_s13 = sadd.s32 1, %s546_s8 }
   0x7   : > { %s21_s14 = ssub.s32 %s550_s9, %s591_s12  ;;  %p31_p0 = scmp.ne.s32.totalorder %s546_s8, %s542_s7 }
   0x8   : > { %p22_p1 = scmp.eq.s32.totalorder %s21_s14, 0  ;;  %p32_p2 = scmp.eq.s32.totalorder %s550_s9, 0 }
   0x9   : > { %p37_p3 = scmp.ne.s32.totalorder %s542_s7, %s538_s6  ;;  %p38_p4 = scmp.eq.s32.totalorder %s587_s10, 0 }
   0xa   : > { %s603_s15 = scalar_select %p22_p1, %s546_s8, %s24_s13  }
   0xb   : > { %p605_p5 = por %p32_p2, %p31_p0  ;;  %p609_p6 = por %p38_p4, %p37_p3 }
   0xc   : > { %p61_p7 = scmp.eq.s32.totalorder %s587_s10, 3  ;;  %p67_p8 = scmp.eq.s32.totalorder %s382_s11, 3 }
   0xd   : > { %p415_p9 = scmp.lt.s32.totalorder %s550_s9, 4  ;;  %s87_s20 = sand.u32 1, %s546_s8  }
   0xe   : > { %p615_p10 = por %p61_p7, %p31_p0  ;;  %p619_p11 = por %p67_p8, %p37_p3 }
   0xf   : > { %s401_s21 = sshll.u32 %s550_s9, 5  ;;  %s385_s22 = sshll.u32 %s87_s20, 5 }
  0x10   : > { %s97_s25 = scalar_lea.hbm %s698_s0, %s401_s21  ;;  %s91_s27 = scalar_lea.vmem [#allocation3], %s385_s22 }
  0x11   : > { %s98_s26 = sshll.u32 %s97_s25, 4  ;;  %s100_s28 = sshll.u32 %s91_s27, 4  ;;  %s99_s26 = int_to_ptr.hbm [resolvable:$true] %s98_s26  ;;  %s101_s28 = int_to_ptr.vmem [resolvable:$true] %s100_s28 }
  0x12   : > { %p630_p12 = pnand %p415_p9, %p605_p5  ;;  %p389_p13 = scmp.ge.s32.totalorder %s550_s9, 1 }
  0x13   : > { %p108_p0 = scmp.lt.s32.totalorder %s550_s9, 5  ;;  %s88_s30 = scalar_lea.sflag [#allocation4], %s87_s20 }
  0x14   : > { %s454_s2 = sshra.s32 %s99_s26, 4  ;;  %p458_p2 = pneg %p630_p12  ;;  %s455_s2 = int_to_ptr.hbm [resolvable:$true] %s454_s2 }
  0x15   : > { %s456_s3 = scalar_lea.hbm %s455_s2, 32  ;;  %s461_s11 = scalar_lea.hbm %s698_s0, 128 }
  0x16   : > { %p457_p1 = scmp.ne.s32.totalorder %s455_s2, %s456_s3  ;;  %p462_p5 = scmp.lt.s32.totalorder %s455_s2, %s698_s0 }
  0x17   : > { %p463_p7 = scmp.lt.s32.totalorder %s461_s11, %s456_s3 }
  0x18   : > { %p459_p3 = pnand %p458_p2, %p457_p1 }
  0x19   : > { %p464_p8 = por %p463_p7, %p462_p5 }
  0x1a   : > { %p460_p4 = pneg %p459_p3 }
  0x1c   : > { %p465_p9 = pnand %p464_p8, %p460_p4 }
  0x1e   : > { %468 = shalt.err (!%p465_p9)
}
  0x1f   : > { %s552_s16 = smov 128   ;;  %s553_s20 = smov 8  }
  0x20   : > { %410 = dma.hbm_to_vmem [thread:$0]  (!%p630_p12), %s99_s26, 512, %s101_s28, %s88_s30, %s552_s16, %s552_s16, %s553_s20  }
  0x21   : > { %p109_p1 = pnand %p389_p13, %p108_p0 }
  0x22   : > { %s651_s21 = sand.u32 (!%p109_p1), 1, %s542_s7  }
  0x23   : > { %112 = sbr.rel (%p109_p1) target bundleno = 412 (0x19c), region = 24  ;;  %s390_s22 = sshll.u32 (!%p109_p1), %s651_s21, 5 }
  0x24   : > { %s115_s23 = scalar_lea.sflag (!%p109_p1), [#allocation4], %s651_s21  ;;  %s118_s24 = scalar_lea.vmem (!%p109_p1), [#allocation3], %s390_s22 }
  0x28   : > { %529 = dma.done.wait (%p609_p6), %s115_s23, 512  }
  0x29   : > { %531 = vsyncadd (%p609_p6), %s115_s23, 4294966784  ;;  %v140_v0 = vld [vmem:[%s118_s24] ss:$2 sm:$0xff]  ;;  %v393_v1 = vld [vmem:[%s118_s24 + $0x1] ss:$2 sm:$0xff]  ;;  %vm213_vm0 = vcmask 64512  }
  0x2a   : > { %v147_v2 = vmax.f32 %v140_v0, %v393_v1  ;;  %v392_v3 = vld [vmem:[%s118_s24 + $0x10] ss:$2 sm:$0xff]  ;;  %v394_v4 = vld [vmem:[%s118_s24 + $0x11] ss:$2 sm:$0xff]  ;;  %s391_s17 = sshll.u32 %s651_s21, 4  ;;  %s402_s26 = sshll.u32 %s587_s10, 4 }
  0x2b   : > { %v148_v5 = vmax.f32 %v392_v3, %v394_v4  ;;  %s137_s25 = scalar_lea.vmem [#allocation6], %s391_s17  ;;  %s305_s29 = scalar_lea.hbm %s699_s1, %s402_s26 }
  0x2c   : > { %149 = vxpose.xlu0.b32.start.end [1/1] (short) (narrow) %v147_v2, 16  ;;  %s306_s30 = sshll.u32 %s137_s25, 4  ;;  %s308_s2 = sshll.u32 %s305_s29, 4  ;;  %s307_s30 = int_to_ptr.vmem [resolvable:$true] %s306_s30  ;;  %s309_s2 = int_to_ptr.hbm [resolvable:$true] %s308_s2 }
  0x2d   : > { %s294_s3 = scalar_lea.sflag [#allocation5], %s651_s21  ;;  %s498_s4 = sshra.s32 %s309_s2, 4  ;;  %s499_s4 = int_to_ptr.hbm [resolvable:$true] %s498_s4 }
  0x2e   : > { %s500_s5 = scalar_lea.hbm %s499_s4, 16  ;;  %s504_s13 = scalar_lea.hbm %s699_s1, 64 }
  0x2f   : > { %p501_p6 = scmp.ne.s32.totalorder %s499_s4, %s500_s5  ;;  %p505_p0 = scmp.lt.s32.totalorder %s499_s4, %s699_s1 }
  0x30   : > { %p506_p2 = scmp.lt.s32.totalorder %s504_s13, %s500_s5 }
  0x31   : > { %p502_p12 = pnand %p501_p6, %p615_p10 }
  0x32   : > { %p507_p3 = por %p506_p2, %p505_p0 }
  0x33   : > { %p503_p13 = pneg %p502_p12 }
  0x35   : > { %p508_p4 = pnand %p507_p3, %p503_p13 }
  0x3c   : > { %181 = vxpose.xlu0.b32.start.end [1/1] (short) (narrow) %v148_v5, 16 }
  0xd0   : > { %v165_v6 = vpop.trf.xlu0 }
  0xd1   : > { %214 = vst.msk [vmem:[#allocation2] sm:$0xff] %vm213_vm0, %v165_v6 }
  0xd8   : > { %v166_v7 = vpop.trf.xlu0 }
  0xd9   : > { %215 = vst.msk [vmem:[#allocation2 + $0x8] sm:$0xff] %vm213_vm0, %v166_v7 }
  0xe0   : > { %v197_v8 = vpop.trf.xlu0  ;;  %v218_v9 = vld [vmem:[#allocation2] ss:$2 sm:$0xff]  ;;  %v222_v10 = vld [vmem:[#allocation2 + $0x1] ss:$2 sm:$0xff] }
  0xe1   : > { %216 = vst.msk [vmem:[#allocation2 + $0x10] sm:$0xff] %vm213_vm0, %v197_v8  ;;  %v225_v11 = vmax.f32 %v218_v9, %v222_v10 }
  0xe3   : > { %227 = vxpose.xlu1.b32.start.end [1/1] (short) (narrow) %v225_v11, 8 }
  0xe8   : > { %v198_v12 = vpop.trf.xlu0 }
  0xe9   : > { %217 = vst.msk [vmem:[#allocation2 + $0x18] sm:$0xff] %vm213_vm0, %v198_v12 }
  0xf0   : > { %v220_v13 = vld [vmem:[#allocation2 + $0x10] ss:$2 sm:$0xff]  ;;  %v224_v14 = vld [vmem:[#allocation2 + $0x11] ss:$2 sm:$0xff] }
  0xf1   : > { %v226_v15 = vmax.f32 %v220_v13, %v224_v14 }
  0xf3   : > { %259 = vxpose.xlu1.b32.start.end [1/1] (short) (narrow) %v226_v15, 8 }
 0x187   : > { %v243_v16 = vpop.trf.xlu1 }
 0x188   : > { %291 = vst.msk [vmem:[%s137_s25] sm:$0xff] %vm213_vm0, %v243_v16 }
 0x197   : > { %v275_v17 = vpop.trf.xlu1 }
 0x198   : > { %292 = vst.msk [vmem:[%s137_s25 + $0x8] sm:$0xff] %vm213_vm0, %v275_v17 }
 0x199   : > { %511 = shalt.err (!%p508_p4)
}
 0x19a   : > { %s554_s20 = smov 128   ;;  %s555_s21 = smov 8  }
 0x19b   : > { %405 = dma.vmem_to_hbm [thread:$0]  (%p615_p10), %s307_s30, 256, %s309_s2, %s294_s3, %s554_s20, %s554_s20, %s555_s21  }
 0x19c PF: > { %p416_p5 = scmp.ge.s32.totalorder %s550_s9, 2  ;;  %s323_s22 = sand.u32 1, %s538_s6  }
 0x19d   : > { %s324_s23 = scalar_lea.sflag [#allocation5], %s323_s22 }
 0x19e   : > { %p412_p7 = pnand %p416_p5, %p619_p11 }
 0x1a0   : > { %p413_p8 = pneg %p412_p7 }
 0x1a2   : > { %533 = dma.done.wait (%p413_p8), %s324_s23, 256  }
 0x1a3   : > { %535 = vsyncadd (%p413_p8), %s324_s23, 4294967040  ;;  %p14_p9 = scmp.ge.s32.totalorder %s591_s12, 6   ;;  %s705_s6 = smov %s542_s7 }
 0x1a4   : > { %s706_s7 = smov %s546_s8  ;;  %s707_s8 = smov %s603_s15 }
 0x1a5   : > { %s708_s9 = smov %s591_s12  ;;  %16 = sbr.rel (!%p14_p9) target bundleno = 5 (0x5), region = 75 }
 0x1aa   :  { %330 = vsyncpa [#allocation4], 1 }
 0x1ab   :  { %332 = vsyncpa [#allocation4 + $0x1], 1 }
 0x1ac   :  { %333 = vsyncpa [#allocation5], 1 }
 0x1ad   :  { %335 = vsyncpa [#allocation5 + $0x1], 1 }

</bundles_post_ra>
